<compile_context>
chip_gen: v7x
topology: tpu7x:2x2x1
jax: 0.10.0
libtpu: 0.0.40
codegen_flags: <defaults>
</compile_context>

<pallas_src>
import functools

import jax
import jax.numpy as jnp
import numpy as np
from jax import lax
from jax.experimental import pallas as pl
from jax.experimental.pallas import tpu as pltpu


def _xca_kernel(x_ref, wq_ref, wk_ref, wv_ref, wpt_ref, temp_ref, bp_ref,
                mask_ref, o_ref,
                g_acc, qss_acc, kss_acc, v_cache, w_eff,
                *, num_heads: int, full_gram: bool):
    # x_ref:    (1, tile_n, C) bf16  token tile (read in phase 0 only)
    # wq/wk/wv: (C, C)         bf16  torch layout (out, in), single-buffered
    # wpt_ref:  (C, C) or (H, Dh, C) bf16  proj weight pre-transposed (in, out)
    # temp_ref: (C, 1) f32     per-head temperature repeated per channel
    # bp_ref:   (1, C) f32     proj bias
    # mask_ref: (C, C) f32     0 on diagonal head blocks, -1e30 off-block
    #                          (only read on the full-Gram path)
    # o_ref:    (1, tile_n, C) f32   output tile (written in phase 1 only)
    # scratch (persists across phase/token axes, reset per batch):
    #   g_acc:   (C, C) | (H, Dh, Dh) f32  cross-covariance accumulator
    #   qss/kss: (C, 1) f32                sum_n q^2 / k^2 per channel
    #   v_cache: (n_tiles, tile_n, C) bf16 cached V (token-major)
    #   w_eff:   (C, C) bf16               attn folded into the projection
    phase = pl.program_id(1)
    nt = pl.program_id(2)

    H = num_heads
    _, tile_n, C = x_ref.shape
    Dh = C // H

    dn_nt = (((1,), (1,)), ((), ()))        # contract last dims: 'ac,bc->ab'
    dn_hnt = (((2,), (2,)), ((0,), (0,)))   # per-head: 'hdn,hen->hde'

    @pl.when(jnp.logical_and(phase == 0, nt == 0))
    def _reset():
        g_acc[...] = jnp.zeros_like(g_acc)
        qss_acc[...] = jnp.zeros_like(qss_acc)
        kss_acc[...] = jnp.zeros_like(kss_acc)

    @pl.when(phase == 0)
    def _accumulate():
        xb = x_ref[0]                                                # (tile_n, C) bf16
        # q/k channels-major, v token-major; bf16 operands, f32 accumulation.
        q_cn = lax.dot_general(wq_ref[...], xb, dn_nt,
                               preferred_element_type=jnp.float32)   # (C, tile_n)
        k_cn = lax.dot_general(wk_ref[...], xb, dn_nt,
                               preferred_element_type=jnp.float32)   # (C, tile_n)
        v_nt = lax.dot_general(xb, wv_ref[...], dn_nt,
                               preferred_element_type=jnp.float32)   # (tile_n, C)
        v_cache[nt] = v_nt.astype(v_cache.dtype)                     # cache for phase 1

        qss_acc[...] += jnp.sum(q_cn * q_cn, axis=-1, keepdims=True)
        kss_acc[...] += jnp.sum(k_cn * k_cn, axis=-1, keepdims=True)

        qb = q_cn.astype(jnp.bfloat16)
        kb = k_cn.astype(jnp.bfloat16)
        if full_gram:
            # Full (C, C) Gram: better 256x256-MXU fill on v6e/v7x.
            g_acc[...] += lax.dot_general(qb, kb, dn_nt,
                                          preferred_element_type=jnp.float32)
        else:
            # Per-head batched (H, Dh, Dh): fewer flops, preferred on v5e.
            g_acc[...] += lax.dot_general(qb.reshape(H, Dh, tile_n),
                                          kb.reshape(H, Dh, tile_n), dn_hnt,
                                          preferred_element_type=jnp.float32)

    @pl.when(phase == 1)
    def _emit():
        @pl.when(nt == 0)
        def _finalize():
            # F.normalize folds into the logits: attn_raw = G / (||q_d|| ||k_e||)
            inv_nq = lax.rsqrt(jnp.maximum(qss_acc[...], 1e-24))     # (C, 1)
            inv_nk = lax.rsqrt(jnp.maximum(kss_acc[...], 1e-24))     # (C, 1)
            row = temp_ref[...] * inv_nq                             # temp folded in
            if full_gram:
                # outer product of the row/column scales (tiny, once per batch)
                scale = lax.dot_general(row, inv_nk, dn_nt,
                                        preferred_element_type=jnp.float32)
                logits = g_acc[...] * scale + mask_ref[...]          # block-diag mask
                logits = logits - jnp.max(logits, axis=-1, keepdims=True)
                p = jnp.exp(logits)
                attn = p / jnp.sum(p, axis=-1, keepdims=True)        # exact softmax
                # W_eff[ci, co] = sum_c A[c, ci] * WpT[c, co]
                w_eff[...] = lax.dot_general(
                    attn.astype(jnp.bfloat16), wpt_ref[...],
                    (((0,), (0,)), ((), ())),
                    preferred_element_type=jnp.float32).astype(w_eff.dtype)
            else:
                scale3 = lax.dot_general(row.reshape(H, Dh, 1),
                                         inv_nk.reshape(H, Dh, 1), dn_hnt,
                                         preferred_element_type=jnp.float32)
                logits = g_acc[...] * scale3                         # (H, Dh, Dh)
                logits = logits - jnp.max(logits, axis=-1, keepdims=True)
                p = jnp.exp(logits)
                attn = p / jnp.sum(p, axis=-1, keepdims=True)
                # W_eff3[h, e, co] = sum_d A[h, d, e] * WpT[h*Dh + d, co]
                weff3 = lax.dot_general(attn.astype(jnp.bfloat16), wpt_ref[...],
                                        (((1,), (1,)), ((0,), (0,))),
                                        preferred_element_type=jnp.float32)
                w_eff[...] = weff3.reshape(C, C).astype(w_eff.dtype)

        # Phase 1 per tile: one dense GEMM on the cached V + bias, lane-dense store.
        v_t = v_cache[nt]                                            # (tile_n, C) bf16
        y = jnp.dot(v_t, w_eff[...], preferred_element_type=jnp.float32)
        o_ref[0] = (y + bp_ref[...]).astype(o_ref.dtype)


def _pick_tile_n(n: int, target: int = 512) -> int:
    """Largest divisor of n <= target, preferring multiples of 128, then of 8."""
    if n <= target:
        return n
    fallback = None
    for t in range(target, 7, -1):
        if n % t == 0:
            if t % 128 == 0:
                return t
            if fallback is None and t % 8 == 0:
                fallback = t
    return fallback if fallback is not None else n


def _auto_full_gram(C: int, H: int) -> bool:
    """Full (C,C) Gram pays off when H > ceil(C/mxu)^2 (v6e/v7x 256x256 MXU)."""
    try:
        kind = jax.devices()[0].device_kind.lower()
    except Exception:
        kind = ""
    mxu = 256 if ("v6" in kind or "v7" in kind) else 128
    return H > pl.cdiv(C, mxu) ** 2


def _vmem_limit_bytes(C: int, tile_n: int, n_tiles: int) -> int:
    try:
        cap = int(pltpu.get_tpu_info().vmem_capacity_bytes)
    except Exception:
        cap = 64 * 2**20
    est = (4 * C * C * 2                 # resident bf16 weights (single-buffered)
           + 2 * C * C * 4               # g_acc scratch + mask
           + 2 * C * C * 2               # w_eff scratch + slack
           + 2 * tile_n * C * 2          # x tile, double-buffered bf16
           + 2 * tile_n * C * 4          # out tile, double-buffered f32
           + n_tiles * tile_n * C * 2    # V cache
           + 8 * tile_n * C * 4          # in-kernel f32 intermediates (q/k/v/y)
           + 6 * C * C * 4               # finalize temporaries
           + (2 << 20))
    return int(min(int(0.85 * cap), max(2 * est, 16 * 2**20)))


def xca_forward(x, w_qkv, temperature, w_proj, b_proj, *, num_heads,
                tile_n=None, full_gram=None):
    """XCA forward. x: (B, N, C) f32. Torch parameter layouts:
       w_qkv (3C, C), temperature (H,) or (H,1,1), w_proj (C, C), b_proj (C,)."""
    B, N, C = x.shape
    assert C % num_heads == 0
    dh = C // num_heads
    if full_gram is None:
        full_gram = _auto_full_gram(C, num_heads)
    if not full_gram:
        assert dh % 8 == 0, "per-head path needs head_dim % 8 == 0"
    if tile_n is None:
        tile_n = _pick_tile_n(N)
    assert N % tile_n == 0
    n_tiles = N // tile_n

    # bf16 matmul operands; f32 accumulation / softmax math stays in-kernel f32.
    xb = x.astype(jnp.bfloat16)
    wq = w_qkv[0 * C:1 * C, :].astype(jnp.bfloat16)
    wk = w_qkv[1 * C:2 * C, :].astype(jnp.bfloat16)
    wv = w_qkv[2 * C:3 * C, :].astype(jnp.bfloat16)
    wpt_2d = jnp.asarray(w_proj, jnp.float32).T                  # (C_in, C_out)
    if full_gram:
        wpt = wpt_2d.astype(jnp.bfloat16)                        # (C, C)
        wpt_shape = (C, C)
    else:
        wpt = wpt_2d.reshape(num_heads, dh, C).astype(jnp.bfloat16)
        wpt_shape = (num_heads, dh, C)
    temp_c = jnp.repeat(jnp.asarray(temperature, jnp.float32).reshape(num_heads),
                        dh).reshape(C, 1)
    bp = jnp.asarray(b_proj, jnp.float32).reshape(1, C)
    # Additive block-diagonal softmax mask (built host-side: no in-kernel int div).
    hid = jnp.arange(C, dtype=jnp.int32) // dh
    mask = jnp.where(hid[:, None] == hid[None, :], 0.0, -1e30).astype(jnp.float32)

    g_shape = (C, C) if full_gram else (num_heads, dh, dh)

    def _resident(shape):
        zeros = (0,) * len(shape)
        # Constant index map + single buffer: fetched once, no wasted VMEM copy.
        return pl.BlockSpec(shape, lambda b, ph, t, _z=zeros: _z,
                            pipeline_mode=pl.Buffered(1))

    def x_index_map(b, ph, t):
        # phase 0 streams token tiles; phase 1 parks on the last tile (no re-fetch).
        return (b, t * (1 - ph) + (n_tiles - 1) * ph, 0)

    def out_index_map(b, ph, t):
        # phase 0 parks the (never written) output window on tile 0; phase 1
        # writes it first, so every block is flushed exactly once, after writing.
        return (b, ph * t, 0)

    kernel = functools.partial(_xca_kernel, num_heads=num_heads,
                               full_gram=full_gram)
    return pl.pallas_call(
        kernel,
        out_shape=jax.ShapeDtypeStruct((B, N, C), jnp.float32),
        grid_spec=pltpu.PrefetchScalarGridSpec(
            num_scalar_prefetch=0,
            grid=(B, 2, n_tiles),                    # batch, phase, token tile
            in_specs=[
                pl.BlockSpec((1, tile_n, C), x_index_map),          # x (bf16)
                _resident((C, C)),                                  # Wq
                _resident((C, C)),                                  # Wk
                _resident((C, C)),                                  # Wv
                _resident(wpt_shape),                               # Wp^T
                _resident((C, 1)),                                  # temperature
                _resident((1, C)),                                  # proj bias
                _resident((C, C)),                                  # softmax mask
            ],
            out_specs=pl.BlockSpec((1, tile_n, C), out_index_map),
            scratch_shapes=[
                pltpu.VMEM(g_shape, jnp.float32),                   # G accumulator
                pltpu.VMEM((C, 1), jnp.float32),                    # sum q^2
                pltpu.VMEM((C, 1), jnp.float32),                    # sum k^2
                pltpu.VMEM((n_tiles, tile_n, C), jnp.bfloat16),     # V cache
                pltpu.VMEM((C, C), jnp.bfloat16),                   # W_eff
            ],
        ),
        compiler_params=pltpu.CompilerParams(
            # phase/token axes carry scratch state -> "arbitrary"; batch is
            # independent -> "parallel" (feeds both TCs on v7x when B >= 2).
            # TODO(synk): for B == 1 on v7x, shard the leading grid over token
            # halves/heads with per-core partial accumulators + a small combine.
            dimension_semantics=("parallel", "arbitrary", "arbitrary"),
            vmem_limit_bytes=_vmem_limit_bytes(C, tile_n, n_tiles),
        ),
    )(xb, wq, wk, wv, wpt, temp_c, bp, mask)


def xca_reference(x, w_qkv, temperature, w_proj, b_proj, *, num_heads):
    """Pure-JAX reference mirroring the PyTorch forward exactly (f32 params)."""
    B, N, C = x.shape
    dh = C // num_heads
    qkv = jnp.einsum('bnc,dc->bnd', x, w_qkv)                 # Linear, no bias
    qkv = qkv.reshape(B, N, 3, num_heads, dh).transpose(2, 0, 3, 1, 4)
    q, k, v = qkv[0], qkv[1], qkv[2]                          # (B, H, N, Dh)
    q = jnp.swapaxes(q, -2, -1)                               # (B, H, Dh, N)
    k = jnp.swapaxes(k, -2, -1)
    v = jnp.swapaxes(v, -2, -1)
    q = q / jnp.maximum(jnp.linalg.norm(q, axis=-1, keepdims=True), 1e-12)
    k = k / jnp.maximum(jnp.linalg.norm(k, axis=-1, keepdims=True), 1e-12)
    attn = (q @ jnp.swapaxes(k, -2, -1)) * jnp.asarray(
        temperature, jnp.float32).reshape(1, num_heads, 1, 1)
    attn = jax.nn.softmax(attn, axis=-1)
    out = attn @ v                                            # (B, H, Dh, N)
    out = out.transpose(0, 3, 1, 2).reshape(B, N, C)
    return out @ w_proj.T + b_proj.reshape(1, 1, C)


if __name__ == "__main__":
    # Small shapes consistent with the module (dim divisible by num_heads).
    B, N, C, H = 2, 32, 32, 4

    key = jax.random.PRNGKey(0)
    kx, kq, kt, kp, kb = jax.random.split(key, 5)

    x = jax.random.normal(kx, (B, N, C), dtype=jnp.float32)
    # Parameters in the original torch layouts (qkv_bias=False default):
    w_qkv = 0.05 * jax.random.normal(kq, (3 * C, C), dtype=jnp.float32)
    temperature = 0.5 + jax.random.uniform(kt, (H,), dtype=jnp.float32)
    w_proj = 0.05 * jax.random.normal(kp, (C, C), dtype=jnp.float32)
    b_proj = 0.01 * jax.random.normal(kb, (C,), dtype=jnp.float32)

    y_ref = xca_reference(x, w_qkv, temperature, w_proj, b_proj, num_heads=H)

    # Multi-tile grid, full-Gram (v6e/v7x-shaped) path.
    y1 = jax.block_until_ready(
        xca_forward(x, w_qkv, temperature, w_proj, b_proj,
                    num_heads=H, tile_n=8, full_gram=True))
    np.testing.assert_allclose(np.asarray(y1), np.asarray(y_ref),
                               rtol=2e-2, atol=2e-2)

    # Multi-tile grid, per-head (v5e-shaped) path.
    y2 = jax.block_until_ready(
        xca_forward(x, w_qkv, temperature, w_proj, b_proj,
                    num_heads=H, tile_n=16, full_gram=False))
    np.testing.assert_allclose(np.asarray(y2), np.asarray(y_ref),
                               rtol=2e-2, atol=2e-2)

    # Single-tile grid + auto path selection for the current device.
    y3 = jax.block_until_ready(
        xca_forward(x, w_qkv, temperature, w_proj, b_proj, num_heads=H))
    np.testing.assert_allclose(np.asarray(y3), np.asarray(y_ref),
                               rtol=2e-2, atol=2e-2)

    print("KERNEL_OK")
</pallas_src>

<mosaic_0001>
module attributes {stable_mosaic.version = 11 : i64} {
  func.func @_xca_kernel(%arg0: i32, %arg1: i32, %arg2: i32, %arg3: memref<1x8x32xbf16, #tpu.memory_space<vmem>>, %arg4: memref<32x32xbf16, #tpu.memory_space<vmem>>, %arg5: memref<32x32xbf16, #tpu.memory_space<vmem>>, %arg6: memref<32x32xbf16, #tpu.memory_space<vmem>>, %arg7: memref<32x32xbf16, #tpu.memory_space<vmem>>, %arg8: memref<32x1xf32, #tpu.memory_space<vmem>>, %arg9: memref<1x32xf32, #tpu.memory_space<vmem>>, %arg10: memref<32x32xf32, #tpu.memory_space<vmem>>, %arg11: memref<1x8x32xf32, #tpu.memory_space<vmem>>, %arg12: memref<32x32xf32, #tpu.memory_space<vmem>>, %arg13: memref<32x1xf32, #tpu.memory_space<vmem>>, %arg14: memref<32x1xf32, #tpu.memory_space<vmem>>, %arg15: memref<4x8x32xbf16, #tpu.memory_space<vmem>>, %arg16: memref<32x32xbf16, #tpu.memory_space<vmem>>) attributes {dimension_semantics = [#tpu.dimension_semantics<parallel>, #tpu.dimension_semantics<arbitrary>, #tpu.dimension_semantics<arbitrary>], iteration_bounds = array<i64: 2, 2, 4>, scalar_prefetch = 0 : i64, scratch_operands = 5 : i64, tpu.core_type = #tpu.core_type<tc>, window_params = [{transform_indices = @transform_0, window_bounds = array<i64: 1, 8, 32>}, {pipeline_mode = #tpu.pipeline_mode<synchronous>, transform_indices = @transform_1, window_bounds = array<i64: 32, 32>}, {pipeline_mode = #tpu.pipeline_mode<synchronous>, transform_indices = @transform_2, window_bounds = array<i64: 32, 32>}, {pipeline_mode = #tpu.pipeline_mode<synchronous>, transform_indices = @transform_3, window_bounds = array<i64: 32, 32>}, {pipeline_mode = #tpu.pipeline_mode<synchronous>, transform_indices = @transform_4, window_bounds = array<i64: 32, 32>}, {pipeline_mode = #tpu.pipeline_mode<synchronous>, transform_indices = @transform_5, window_bounds = array<i64: 32, 1>}, {pipeline_mode = #tpu.pipeline_mode<synchronous>, transform_indices = @transform_6, window_bounds = array<i64: 1, 32>}, {pipeline_mode = #tpu.pipeline_mode<synchronous>, transform_indices = @transform_7, window_bounds = array<i64: 32, 32>}, {transform_indices = @transform_8, window_bounds = array<i64: 1, 8, 32>}]} {
    %c0_i32 = arith.constant 0 : i32
    %0 = arith.cmpi eq, %arg1, %c0_i32 : i32
    %c0_i32_0 = arith.constant 0 : i32
    %1 = arith.cmpi eq, %arg2, %c0_i32_0 : i32
    %2 = arith.andi %0, %1 : i1
    %3 = arith.extui %2 : i1 to i32
    %c0_i32_1 = arith.constant 0 : i32
    %4 = arith.cmpi ne, %3, %c0_i32_1 : i32
    scf.if %4 {
      %cst = arith.constant 0.000000e+00 : f32
      %11 = vector.broadcast %cst : f32 to vector<32x32xf32>
      %c0 = arith.constant 0 : index
      %c0_5 = arith.constant 0 : index
      %12 = vector.load %arg12[%c0, %c0_5] : memref<32x32xf32, #tpu.memory_space<vmem>>, vector<32x32xf32>
      tpu.vector_store %arg12[%c0, %c0_5], %11 {strides = array<i32>} : memref<32x32xf32, #tpu.memory_space<vmem>>, vector<32x32xf32>,
      %cst_6 = arith.constant 0.000000e+00 : f32
      %13 = vector.broadcast %cst_6 : f32 to vector<32x1xf32>
      %c0_7 = arith.constant 0 : index
      %c0_8 = arith.constant 0 : index
      %14 = vector.load %arg13[%c0_7, %c0_8] : memref<32x1xf32, #tpu.memory_space<vmem>>, vector<32x1xf32>
      tpu.vector_store %arg13[%c0_7, %c0_8], %13 {strides = array<i32>} : memref<32x1xf32, #tpu.memory_space<vmem>>, vector<32x1xf32>,
      %cst_9 = arith.constant 0.000000e+00 : f32
      %15 = vector.broadcast %cst_9 : f32 to vector<32x1xf32>
      %c0_10 = arith.constant 0 : index
      %c0_11 = arith.constant 0 : index
      %16 = vector.load %arg14[%c0_10, %c0_11] : memref<32x1xf32, #tpu.memory_space<vmem>>, vector<32x1xf32>
      tpu.vector_store %arg14[%c0_10, %c0_11], %15 {strides = array<i32>} : memref<32x1xf32, #tpu.memory_space<vmem>>, vector<32x1xf32>,
    } else {
    }
    %c0_i32_2 = arith.constant 0 : i32
    %5 = arith.cmpi eq, %arg1, %c0_i32_2 : i32
    %6 = arith.extui %5 : i1 to i32
    %c0_i32_3 = arith.constant 0 : i32
    %7 = arith.cmpi ne, %6, %c0_i32_3 : i32
    scf.if %7 {
      %c0 = arith.constant 0 : index
      %c0_5 = arith.constant 0 : index
      %c0_6 = arith.constant 0 : index
      %11 = vector.load %arg3[%c0, %c0_5, %c0_6] : memref<1x8x32xbf16, #tpu.memory_space<vmem>>, vector<1x8x32xbf16>
      %12 = vector.shape_cast %11 : vector<1x8x32xbf16> to vector<8x32xbf16>
      %c0_7 = arith.constant 0 : index
      %c0_8 = arith.constant 0 : index
      %13 = vector.load %arg4[%c0_7, %c0_8] : memref<32x32xbf16, #tpu.memory_space<vmem>>, vector<32x32xbf16>
      %cst = arith.constant dense<0.000000e+00> : vector<32x8xf32>
      %14 = tpu.matmul %13, %12, %cst {dimension_numbers = #tpu.dot_dimension_numbers<[1], [1], [0], [0], [0, 0, 1, 0], [], []>} : vector<32x32xbf16>, vector<8x32xbf16>, vector<32x8xf32> -> vector<32x8xf32>
      %c0_9 = arith.constant 0 : index
      %c0_10 = arith.constant 0 : index
      %15 = vector.load %arg5[%c0_9, %c0_10] : memref<32x32xbf16, #tpu.memory_space<vmem>>, vector<32x32xbf16>
      %cst_11 = arith.constant dense<0.000000e+00> : vector<32x8xf32>
      %16 = tpu.matmul %15, %12, %cst_11 {dimension_numbers = #tpu.dot_dimension_numbers<[1], [1], [0], [0], [0, 0, 1, 0], [], []>} : vector<32x32xbf16>, vector<8x32xbf16>, vector<32x8xf32> -> vector<32x8xf32>
      %c0_12 = arith.constant 0 : index
      %c0_13 = arith.constant 0 : index
      %17 = vector.load %arg6[%c0_12, %c0_13] : memref<32x32xbf16, #tpu.memory_space<vmem>>, vector<32x32xbf16>
      %cst_14 = arith.constant dense<0.000000e+00> : vector<8x32xf32>
      %18 = tpu.matmul %12, %17, %cst_14 {dimension_numbers = #tpu.dot_dimension_numbers<[1], [1], [0], [0], [0, 0, 1, 0], [], []>} : vector<8x32xbf16>, vector<32x32xbf16>, vector<8x32xf32> -> vector<8x32xf32>
      %19 = arith.truncf %18 : vector<8x32xf32> to vector<8x32xbf16>
      %20 = arith.index_cast %arg2 : i32 to index
      %c0_15 = arith.constant 0 : index
      %c0_16 = arith.constant 0 : index
      %21 = vector.load %arg15[%20, %c0_15, %c0_16] : memref<4x8x32xbf16, #tpu.memory_space<vmem>>, vector<1x8x32xbf16>
      %22 = vector.shape_cast %21 : vector<1x8x32xbf16> to vector<8x32xbf16>
      %23 = vector.shape_cast %19 : vector<8x32xbf16> to vector<1x8x32xbf16>
      tpu.vector_store %arg15[%20, %c0_15, %c0_16], %23 {strides = array<i32>} : memref<4x8x32xbf16, #tpu.memory_space<vmem>>, vector<1x8x32xbf16>,
      %c0_17 = arith.constant 0 : index
      %c0_18 = arith.constant 0 : index
      %24 = vector.load %arg13[%c0_17, %c0_18] : memref<32x1xf32, #tpu.memory_space<vmem>>, vector<32x1xf32>
      %25 = arith.mulf %14, %14 : vector<32x8xf32>
      %cst_19 = arith.constant dense<0.000000e+00> : vector<32xf32>
      %26 = vector.multi_reduction <add>, %25, %cst_19 [1] : vector<32x8xf32> to vector<32xf32>
      %27 = vector.shape_cast %26 : vector<32xf32> to vector<32x1xf32>
      %28 = arith.addf %24, %27 : vector<32x1xf32>
      %c0_20 = arith.constant 0 : index
      %c0_21 = arith.constant 0 : index
      %29 = vector.load %arg13[%c0_20, %c0_21] : memref<32x1xf32, #tpu.memory_space<vmem>>, vector<32x1xf32>
      tpu.vector_store %arg13[%c0_20, %c0_21], %28 {strides = array<i32>} : memref<32x1xf32, #tpu.memory_space<vmem>>, vector<32x1xf32>,
      %c0_22 = arith.constant 0 : index
      %c0_23 = arith.constant 0 : index
      %30 = vector.load %arg14[%c0_22, %c0_23] : memref<32x1xf32, #tpu.memory_space<vmem>>, vector<32x1xf32>
      %31 = arith.mulf %16, %16 : vector<32x8xf32>
      %cst_24 = arith.constant dense<0.000000e+00> : vector<32xf32>
      %32 = vector.multi_reduction <add>, %31, %cst_24 [1] : vector<32x8xf32> to vector<32xf32>
      %33 = vector.shape_cast %32 : vector<32xf32> to vector<32x1xf32>
      %34 = arith.addf %30, %33 : vector<32x1xf32>
      %c0_25 = arith.constant 0 : index
      %c0_26 = arith.constant 0 : index
      %35 = vector.load %arg14[%c0_25, %c0_26] : memref<32x1xf32, #tpu.memory_space<vmem>>, vector<32x1xf32>
      tpu.vector_store %arg14[%c0_25, %c0_26], %34 {strides = array<i32>} : memref<32x1xf32, #tpu.memory_space<vmem>>, vector<32x1xf32>,
      %36 = arith.truncf %14 : vector<32x8xf32> to vector<32x8xbf16>
      %37 = arith.truncf %16 : vector<32x8xf32> to vector<32x8xbf16>
      %c0_27 = arith.constant 0 : index
      %c0_28 = arith.constant 0 : index
      %38 = vector.load %arg12[%c0_27, %c0_28] : memref<32x32xf32, #tpu.memory_space<vmem>>, vector<32x32xf32>
      %cst_29 = arith.constant dense<0.000000e+00> : vector<32x32xf32>
      %39 = tpu.matmul %36, %37, %cst_29 {dimension_numbers = #tpu.dot_dimension_numbers<[1], [1], [0], [0], [0, 0, 1, 0], [], []>} : vector<32x8xbf16>, vector<32x8xbf16>, vector<32x32xf32> -> vector<32x32xf32>
      %40 = arith.addf %38, %39 : vector<32x32xf32>
      %c0_30 = arith.constant 0 : index
      %c0_31 = arith.constant 0 : index
      %41 = vector.load %arg12[%c0_30, %c0_31] : memref<32x32xf32, #tpu.memory_space<vmem>>, vector<32x32xf32>
      tpu.vector_store %arg12[%c0_30, %c0_31], %40 {strides = array<i32>} : memref<32x32xf32, #tpu.memory_space<vmem>>, vector<32x32xf32>,
    } else {
    }
    %c1_i32 = arith.constant 1 : i32
    %8 = arith.cmpi eq, %arg1, %c1_i32 : i32
    %9 = arith.extui %8 : i1 to i32
    %c0_i32_4 = arith.constant 0 : i32
    %10 = arith.cmpi ne, %9, %c0_i32_4 : i32
    scf.if %10 {
      %c0_i32_5 = arith.constant 0 : i32
      %11 = arith.cmpi eq, %arg2, %c0_i32_5 : i32
      %12 = arith.extui %11 : i1 to i32
      %c0_i32_6 = arith.constant 0 : i32
      %13 = arith.cmpi ne, %12, %c0_i32_6 : i32
      scf.if %13 {
        %c0_15 = arith.constant 0 : index
        %c0_16 = arith.constant 0 : index
        %25 = vector.load %arg13[%c0_15, %c0_16] : memref<32x1xf32, #tpu.memory_space<vmem>>, vector<32x1xf32>
        %cst_17 = arith.constant 1.000000e-24 : f32
        %26 = vector.broadcast %cst_17 : f32 to vector<32x1xf32>
        %27 = arith.maximumf %25, %26 : vector<32x1xf32>
        %28 = math.rsqrt %27 : vector<32x1xf32>
        %c0_18 = arith.constant 0 : index
        %c0_19 = arith.constant 0 : index
        %29 = vector.load %arg14[%c0_18, %c0_19] : memref<32x1xf32, #tpu.memory_space<vmem>>, vector<32x1xf32>
        %cst_20 = arith.constant 1.000000e-24 : f32
        %30 = vector.broadcast %cst_20 : f32 to vector<32x1xf32>
        %31 = arith.maximumf %29, %30 : vector<32x1xf32>
        %32 = math.rsqrt %31 : vector<32x1xf32>
        %c0_21 = arith.constant 0 : index
        %c0_22 = arith.constant 0 : index
        %33 = vector.load %arg8[%c0_21, %c0_22] : memref<32x1xf32, #tpu.memory_space<vmem>>, vector<32x1xf32>
        %34 = arith.mulf %33, %28 : vector<32x1xf32>
        %cst_23 = arith.constant dense<0.000000e+00> : vector<32x32xf32>
        %35 = tpu.matmul %34, %32, %cst_23 {dimension_numbers = #tpu.dot_dimension_numbers<[1], [1], [0], [0], [0, 0, 1, 0], [], []>} : vector<32x1xf32>, vector<32x1xf32>, vector<32x32xf32> -> vector<32x32xf32>
        %c0_24 = arith.constant 0 : index
        %c0_25 = arith.constant 0 : index
        %36 = vector.load %arg12[%c0_24, %c0_25] : memref<32x32xf32, #tpu.memory_space<vmem>>, vector<32x32xf32>
        %37 = arith.mulf %36, %35 : vector<32x32xf32>
        %c0_26 = arith.constant 0 : index
        %c0_27 = arith.constant 0 : index
        %38 = vector.load %arg10[%c0_26, %c0_27] : memref<32x32xf32, #tpu.memory_space<vmem>>, vector<32x32xf32>
        %39 = arith.addf %37, %38 : vector<32x32xf32>
        %cst_28 = arith.constant dense<0xFF800000> : vector<32xf32>
        %40 = vector.multi_reduction <maximumf>, %39, %cst_28 [1] : vector<32x32xf32> to vector<32xf32>
        %41 = vector.shape_cast %40 : vector<32xf32> to vector<32x1xf32>
        %42 = vector.broadcast %41 : vector<32x1xf32> to vector<32x32xf32>
        %43 = arith.subf %39, %42 : vector<32x32xf32>
        %44 = math.exp %43 : vector<32x32xf32>
        %cst_29 = arith.constant dense<0.000000e+00> : vector<32xf32>
        %45 = vector.multi_reduction <add>, %44, %cst_29 [1] : vector<32x32xf32> to vector<32xf32>
        %46 = vector.shape_cast %45 : vector<32xf32> to vector<32x1xf32>
        %47 = vector.broadcast %46 : vector<32x1xf32> to vector<32x32xf32>
        %48 = arith.divf %44, %47 : vector<32x32xf32>
        %49 = arith.truncf %48 : vector<32x32xf32> to vector<32x32xbf16>
        %c0_30 = arith.constant 0 : index
        %c0_31 = arith.constant 0 : index
        %50 = vector.load %arg7[%c0_30, %c0_31] : memref<32x32xbf16, #tpu.memory_space<vmem>>, vector<32x32xbf16>
        %cst_32 = arith.constant dense<0.000000e+00> : vector<32x32xf32>
        %51 = tpu.matmul %49, %50, %cst_32 {dimension_numbers = #tpu.dot_dimension_numbers<[0], [0], [1], [1], [0, 1, 1, 1], [], []>} : vector<32x32xbf16>, vector<32x32xbf16>, vector<32x32xf32> -> vector<32x32xf32>
        %52 = arith.truncf %51 : vector<32x32xf32> to vector<32x32xbf16>
        %c0_33 = arith.constant 0 : index
        %c0_34 = arith.constant 0 : index
        %53 = vector.load %arg16[%c0_33, %c0_34] : memref<32x32xbf16, #tpu.memory_space<vmem>>, vector<32x32xbf16>
        tpu.vector_store %arg16[%c0_33, %c0_34], %52 {strides = array<i32>} : memref<32x32xbf16, #tpu.memory_space<vmem>>, vector<32x32xbf16>,
      } else {
      }
      %14 = arith.index_cast %arg2 : i32 to index
      %c0 = arith.constant 0 : index
      %c0_7 = arith.constant 0 : index
      %15 = vector.load %arg15[%14, %c0, %c0_7] : memref<4x8x32xbf16, #tpu.memory_space<vmem>>, vector<1x8x32xbf16>
      %16 = vector.shape_cast %15 : vector<1x8x32xbf16> to vector<8x32xbf16>
      %c0_8 = arith.constant 0 : index
      %c0_9 = arith.constant 0 : index
      %17 = vector.load %arg16[%c0_8, %c0_9] : memref<32x32xbf16, #tpu.memory_space<vmem>>, vector<32x32xbf16>
      %cst = arith.constant dense<0.000000e+00> : vector<8x32xf32>
      %18 = tpu.matmul %16, %17, %cst {dimension_numbers = #tpu.dot_dimension_numbers<[1], [0], [0], [1], [0, 0, 1, 1], [], []>} : vector<8x32xbf16>, vector<32x32xbf16>, vector<8x32xf32> -> vector<8x32xf32>
      %c0_10 = arith.constant 0 : index
      %c0_11 = arith.constant 0 : index
      %19 = vector.load %arg9[%c0_10, %c0_11] : memref<1x32xf32, #tpu.memory_space<vmem>>, vector<1x32xf32>
      %20 = vector.broadcast %19 : vector<1x32xf32> to vector<8x32xf32>
      %21 = arith.addf %18, %20 : vector<8x32xf32>
      %c0_12 = arith.constant 0 : index
      %c0_13 = arith.constant 0 : index
      %c0_14 = arith.constant 0 : index
      %22 = vector.load %arg11[%c0_12, %c0_13, %c0_14] : memref<1x8x32xf32, #tpu.memory_space<vmem>>, vector<1x8x32xf32>
      %23 = vector.shape_cast %22 : vector<1x8x32xf32> to vector<8x32xf32>
      %24 = vector.shape_cast %21 : vector<8x32xf32> to vector<1x8x32xf32>
      tpu.vector_store %arg11[%c0_12, %c0_13, %c0_14], %24 {strides = array<i32>} : memref<1x8x32xf32, #tpu.memory_space<vmem>>, vector<1x8x32xf32>,
    } else {
    }
    return
  }
  func.func @transform_0(%arg0: i32, %arg1: i32, %arg2: i32) -> (i32, i32, i32) {
    %c1_i32 = arith.constant 1 : i32
    %0 = arith.subi %c1_i32, %arg1 : i32
    %1 = arith.muli %arg2, %0 : i32
    %c3_i32 = arith.constant 3 : i32
    %2 = arith.muli %c3_i32, %arg1 : i32
    %3 = arith.addi %1, %2 : i32
    %c0_i32 = arith.constant 0 : i32
    %c0_i32_0 = arith.constant 0 : i32
    return %arg0, %3, %c0_i32 : i32, i32, i32
  }
  func.func @transform_1(%arg0: i32, %arg1: i32, %arg2: i32) -> (i32, i32) {
    %c0_i32 = arith.constant 0 : i32
    %c0_i32_0 = arith.constant 0 : i32
    %c0_i32_1 = arith.constant 0 : i32
    return %c0_i32, %c0_i32_0 : i32, i32
  }
  func.func @transform_2(%arg0: i32, %arg1: i32, %arg2: i32) -> (i32, i32) {
    %c0_i32 = arith.constant 0 : i32
    %c0_i32_0 = arith.constant 0 : i32
    %c0_i32_1 = arith.constant 0 : i32
    return %c0_i32, %c0_i32_0 : i32, i32
  }
  func.func @transform_3(%arg0: i32, %arg1: i32, %arg2: i32) -> (i32, i32) {
    %c0_i32 = arith.constant 0 : i32
    %c0_i32_0 = arith.constant 0 : i32
    %c0_i32_1 = arith.constant 0 : i32
    return %c0_i32, %c0_i32_0 : i32, i32
  }
  func.func @transform_4(%arg0: i32, %arg1: i32, %arg2: i32) -> (i32, i32) {
    %c0_i32 = arith.constant 0 : i32
    %c0_i32_0 = arith.constant 0 : i32
    %c0_i32_1 = arith.constant 0 : i32
    return %c0_i32, %c0_i32_0 : i32, i32
  }
  func.func @transform_5(%arg0: i32, %arg1: i32, %arg2: i32) -> (i32, i32) {
    %c0_i32 = arith.constant 0 : i32
    %c0_i32_0 = arith.constant 0 : i32
    %c0_i32_1 = arith.constant 0 : i32
    return %c0_i32, %c0_i32_0 : i32, i32
  }
  func.func @transform_6(%arg0: i32, %arg1: i32, %arg2: i32) -> (i32, i32) {
    %c0_i32 = arith.constant 0 : i32
    %c0_i32_0 = arith.constant 0 : i32
    %c0_i32_1 = arith.constant 0 : i32
    return %c0_i32, %c0_i32_0 : i32, i32
  }
  func.func @transform_7(%arg0: i32, %arg1: i32, %arg2: i32) -> (i32, i32) {
    %c0_i32 = arith.constant 0 : i32
    %c0_i32_0 = arith.constant 0 : i32
    %c0_i32_1 = arith.constant 0 : i32
    return %c0_i32, %c0_i32_0 : i32, i32
  }
  func.func @transform_8(%arg0: i32, %arg1: i32, %arg2: i32) -> (i32, i32, i32) {
    %0 = arith.muli %arg1, %arg2 : i32
    %c0_i32 = arith.constant 0 : i32
    %c0_i32_0 = arith.constant 0 : i32
    return %arg0, %0, %c0_i32 : i32, i32, i32
  }
}

</mosaic_0001>

<bundles_post_ra>
// kernel: tpu_custom_call.1
= control target key start
LH: loop header
LB: loop body
LE: loop exit
PB: predicated region body
PF: predicated region fallthrough
CT: control target
= control target key end

     0   :  { %s2310_s0 = inlined_call_operand.vmem [shape: bf16[2,32,32], index: 0, kind: input, shape index: {}]   ;;  %s2311_s1 = inlined_call_operand.hbm [shape: bf16[32,32], index: 1, kind: input, shape index: {}]   ;;  %s2312_s2 = inlined_call_operand.hbm [shape: bf16[32,32], index: 2, kind: input, shape index: {}]   ;;  %s2313_s3 = inlined_call_operand.hbm [shape: bf16[32,32], index: 3, kind: input, shape index: {}]   ;;  %s2314_s4 = inlined_call_operand.vmem [shape: bf16[32,32], index: 4, kind: input, shape index: {}]   ;;  %s2315_s5 = inlined_call_operand.vmem [shape: f32[32,1], index: 5, kind: input, shape index: {}]   ;;  %s2316_s6 = inlined_call_operand.vmem [shape: f32[1,32], index: 6, kind: input, shape index: {}]   ;;  %s2317_s7 = inlined_call_operand.hbm [shape: f32[32,32], index: 7, kind: input, shape index: {}]   ;;  %s2318_s8 = inlined_call_operand.hbm [shape: f32[2,32,32], index: 8, kind: output, shape index: {}]  }
   0x1   :  { %2335 = sst [smem:[#allocation31_spill]] %s2318_s8 }
   0x2   :  { %13 = vsyncpa [#allocation8], 0 }
   0x3   :  { %14 = vsyncpa [#allocation11], 0 }
   0x4   :  { %15 = vsyncpa [#allocation14], 0 }
   0x5   :  { %16 = vsyncpa [#allocation9], 0 }
   0x6   :  { %18 = vsyncpa [#allocation9 + $0x1], 0  ;;  %s1927_s27 = smov 0   ;;  %s1929_s28 = smov 0  }
   0x7   :  { %s1931_s29 = smov 0   ;;  %s1933_s30 = smov 0  }
   0x8   :  { %s1935_s9 = smov 0   ;;  %s1937_s10 = smov 0  }
   0x9   :  { %s1939_s11 = smov 0   ;;  %s1941_s12 = smov 0  }
   0xa   :  { %s1943_s13 = smov 0   ;;  %s1945_s14 = smov 0  }
   0xb LB: > { %2336 = sst [smem:[#allocation20_spill]] %s1830_s27  ;;  %s1299_s15 = sadd.s32 4294967295, %s1866_s14   ;;  %s1866_s14 = sphi %s1945_s14, %s24_s14   ;;  %s1862_s13 = sphi %s1943_s13, %s2370_s13   ;;  %s1858_s12 = sphi %s1941_s12, %s2369_s12   ;;  %s1854_s11 = sphi %s1939_s11, %s2368_s11   ;;  %s1850_s10 = sphi %s1937_s10, %s2367_s10   ;;  %s1846_s9 = sphi %s1935_s9, %s2366_s9   ;;  %s1842_s30 = sphi %s1933_s30, %s2365_s30   ;;  %s1838_s29 = sphi %s1931_s29, %s2364_s29   ;;  %s1834_s28 = sphi %s1929_s28, %s2372_s28   ;;  %s1830_s27 = sphi %s1927_s27, %s2371_s27  }
   0xc   : > { %2337 = sst [smem:[#allocation21_spill]] %s1838_s29  ;;  %s1300_s16 = sadd.s32 4294967294, %s1866_s14  }
   0xd   : > { %2338 = sst [smem:[#allocation22_spill]] %s1854_s11  ;;  %s36_s17 = sadd.s32 1, %s1854_s11 }
   0xe   : > { %2339 = sst [smem:[#allocation23_spill]] %s1858_s12  ;;  %s39_s18 = sadd.s32 1, %s1858_s12 }
   0xf   : > { %2340 = sst [smem:[#allocation24_spill]] %s1862_s13  ;;  %p37_p0 = scmp.ge.s32.totalorder %s36_s17, 4 }
  0x10   : > { %2341 = sst [smem:[#allocation25_spill]] %s1866_s14  ;;  %s43_s19 = sadd.s32 1, %s1862_s13 }
  0x11   : > { %s230_s20 = smul.u32 %s1854_s11, %s1858_s12  ;;  %s237_s21 = sadd.s32 1, %s1838_s29 }
  0x12   : > { %s2374_s17 = smov (%p37_p0, %s36_s17), 0  ;;  %s2376_s18 = smov (!%p37_p0, %s39_s18), %s1858_s12 }
  0x13   : > { %2342 = sst [smem:[#allocation26_spill]] %s2374_s17  ;;  %p247_p1 = scmp.ne.s32.totalorder %s1838_s29, %s1834_s28 }
  0x14   : > { %p248_p2 = scmp.eq.s32.totalorder %s1299_s15, 15  ;;  %p41_p3 = scmp.ge.s32.totalorder %s2376_s18, 2 }
  0x15   : > { %p253_p4 = scmp.ne.s32.totalorder %s1834_s28, %s1830_s27  ;;  %p254_p6 = scmp.eq.s32.totalorder %s1300_s16, 15 }
  0x16   : > { %p1992_p5 = por %p248_p2, %p247_p1  ;;  %s2378_s18 = smov (%p41_p3, %s2376_s18), 0 }
  0x17   : > { %2344 = sst [smem:[#allocation27_spill]] %s2378_s18  ;;  %s2380_s19 = smov (!%p41_p3, %s43_s19), %s1862_s13 }
  0x18   : > { %s2343_s22 = scalar_select %p1992_p5, 1, 0 }
  0x19   : > { %s231_s23 = smul.u32 %s2378_s18, %s2374_s17  ;;  %p2001_p7 = por %p254_p6, %p253_p4 }
  0x1a   : > { %p45_p8 = scmp.ge.s32.totalorder %s2380_s19, 2  ;;  %p1301_p9 = scmp.ge.s32.totalorder %s1866_s14, 1 }
  0x1b   : > { %s2345_s24 = scalar_select %p2001_p7, 1, 0 }
  0x1c   : > { %s233_s25 = ssub.s32 %s230_s20, %s231_s23  ;;  %p261_p10 = scmp.lt.s32.totalorder %s1866_s14, 17 }
  0x1d   : > { %2346 = sst [smem:[#allocation28_spill]] %s2345_s24  ;;  %s2382_s19 = smov (%p45_p8, %s2380_s19), 0 }
  0x1e   : > { %2347 = sst [smem:[#allocation29_spill]] %s2382_s19  ;;  %p2009_p11 = pnand %p1301_p9, %p261_p10 }
  0x1f   : > { %s232_s16 = ssub.s32 %s1862_s13, %s2382_s19  ;;  %p2015_p12 = scmp.eq.s32.totalorder %s1299_s15, 0 }
  0x20   : > { %s2348_s26 = scalar_select %p2009_p11, 1, 0 }
  0x21   : > { %s2349_s12 = scalar_select %p2015_p12, 1, 0 }
  0x22   : > { %s234_s18 = sor.u32 %s233_s25, %s232_s16  ;;  %p1472_p13 = pneg %p2009_p11 }
  0x23   : > { %p235_p0 = scmp.eq.s32.totalorder %s234_s18, 0  ;;  %s1868_s17 = smov [#allocation10]  }
  0x24   : > { %p2023_p1 = pnand %p2015_p12, %p1472_p13  ;;  %s286_s11 = sshll.u32 %s1868_s17, 4  ;;  %s287_s11 = int_to_ptr.vmem [resolvable:$true] %s286_s11 }
  0x25   : > { %s2028_s23 = scalar_select %p235_p0, %s1838_s29, %s237_s21  }
  0x26   : > { %s1632_s13 = scalar_lea.hbm %s2312_s2, 256  ;;  %p2038_p3 = pneg %p2023_p1 }
  0x27   : > { %2351 = sst [smem:[#allocation30_spill]] %s2028_s23  ;;  %p1633_p2 = scmp.ne.s32.totalorder %s2312_s2, %s1632_s13 }
  0x28   : > { %p1639_p8 = scmp.lt.u32.totalorder %s1632_s13, %s2312_s2 }
  0x29   : > { %p1635_p4 = pnand %p2038_p3, %p1633_p2 }
  0x2b   : > { %p1636_p6 = pneg %p1635_p4 }
  0x2d   : > { %p1641_p9 = pnand %p1639_p8, %p1636_p6 }
  0x2f   : > { %1644 = shalt.err (!%p1641_p9)
}
  0x30   : > { %s1645_s19 = scalar_lea.vmem %s287_s11, 256  ;;  %p1653_p7 = scmp.lt.s32.totalorder %s287_s11, %s287_s11 }
  0x31   : > { %p1646_p10 = scmp.ne.s32.totalorder %s287_s11, %s1645_s19  ;;  %p1654_p5 = scmp.lt.s32.totalorder %s1645_s19, %s1645_s19 }
  0x33   : > { %p1648_p13 = pnand %p1646_p10, %p2038_p3  ;;  %p1655_p12 = por %p1654_p5, %p1653_p7 }
  0x35   : > { %p1649_p0 = pneg %p1648_p13 }
  0x37   : > { %p1656_p11 = pnand %p1655_p12, %p1649_p0 }
  0x39   : > { %1659 = shalt.err (!%p1656_p11)
}
  0x3a   : > { %s1869_s24 = smov 64   ;;  %s1870_s16 = smov 4  }
  0x3b   : > { %1478 = dma.hbm_to_vmem [thread:$0]  (!%p2023_p1), %s2312_s2, 256, %s287_s11, [#allocation11], %s1869_s24, %s1869_s24, %s1870_s16  }
  0x3c   : > { %s1871_s25 = smov [#allocation7]   ;;  %s1872_s17 = smov [#allocation12]  }
  0x3d   : > { %s273_s21 = sshll.u32 %s1871_s25, 4  ;;  %s299_s23 = sshll.u32 %s1872_s17, 4  ;;  %s274_s21 = int_to_ptr.vmem [resolvable:$true] %s273_s21  ;;  %s2057_s23 = int_to_ptr.vmem [resolvable:$true] %s299_s23 }
  0x3e   : > { %s1660_s27 = scalar_lea.hbm %s2311_s1, 256 }
  0x3f   : > { %p1661_p5 = scmp.ne.s32.totalorder %s2311_s1, %s1660_s27  ;;  %p1667_p12 = scmp.lt.u32.totalorder %s1660_s27, %s2311_s1 }
  0x41   : > { %p1663_p7 = pnand %p1661_p5, %p2038_p3 }
  0x43   : > { %p1664_p11 = pneg %p1663_p7 }
  0x45   : > { %p1669_p2 = pnand %p1667_p12, %p1664_p11 }
  0x47   : > { %1672 = shalt.err (!%p1669_p2)
}
  0x48   : > { %s1673_s15 = scalar_lea.vmem %s274_s21, 256  ;;  %p1681_p9 = scmp.lt.s32.totalorder %s274_s21, %s274_s21 }
  0x49   : > { %p1674_p4 = scmp.ne.s32.totalorder %s274_s21, %s1673_s15  ;;  %p1682_p10 = scmp.lt.s32.totalorder %s1673_s15, %s1673_s15 }
  0x4b   : > { %p1676_p6 = pnand %p1674_p4, %p2038_p3  ;;  %p1683_p13 = por %p1682_p10, %p1681_p9 }
  0x4d   : > { %p1677_p8 = pneg %p1676_p6 }
  0x4f   : > { %p1684_p0 = pnand %p1683_p13, %p1677_p8 }
  0x51   : > { %1687 = shalt.err (!%p1684_p0)
}
  0x52   : > { %1475 = dma.hbm_to_vmem [thread:$0]  (!%p2023_p1), %s2311_s1, 256, %s274_s21, [#allocation8], %s1869_s24, %s1869_s24, %s1870_s16  }
  0x53   : > { %s1688_s25 = scalar_lea.hbm %s2313_s3, 256 }
  0x54   : > { %p1689_p5 = scmp.ne.s32.totalorder %s2313_s3, %s1688_s25  ;;  %p1695_p12 = scmp.lt.u32.totalorder %s1688_s25, %s2313_s3 }
  0x56   : > { %p1691_p7 = pnand %p1689_p5, %p2038_p3 }
  0x58   : > { %p1692_p11 = pneg %p1691_p7 }
  0x5a   : > { %p1697_p2 = pnand %p1695_p12, %p1692_p11 }
  0x5c   : > { %1700 = shalt.err (!%p1697_p2)
}
  0x5d   : > { %s1701_s21 = scalar_lea.vmem %s2057_s23, 256  ;;  %p1709_p9 = scmp.lt.s32.totalorder %s2057_s23, %s2057_s23 }
  0x5e   : > { %p1702_p4 = scmp.ne.s32.totalorder %s2057_s23, %s1701_s21  ;;  %p1710_p10 = scmp.lt.s32.totalorder %s1701_s21, %s1701_s21 }
  0x60   : > { %p1704_p6 = pnand %p1702_p4, %p2038_p3  ;;  %p1711_p13 = por %p1710_p10, %p1709_p9 }
  0x62   : > { %p1705_p8 = pneg %p1704_p6 }
  0x64   : > { %p1712_p0 = pnand %p1711_p13, %p1705_p8 }
  0x66   : > { %1715 = shalt.err (!%p1712_p0)
}
  0x67   : > { %1481 = dma.hbm_to_vmem [thread:$0]  (!%p2023_p1), %s2313_s3, 256, %s2057_s23, [#allocation11], %s1869_s24, %s1869_s24, %s1870_s16  }
  0x68   : > { %s1873_s27 = smov [#allocation13]   ;;  %s1716_s17 = scalar_lea.hbm %s2317_s7, 512 }
  0x69   : > { %s321_s29 = sshll.u32 %s1873_s27, 4  ;;  %p1717_p5 = scmp.ne.s32.totalorder %s2317_s7, %s1716_s17  ;;  %s322_s29 = int_to_ptr.vmem [resolvable:$true] %s321_s29 }
  0x6a   : > { %p1723_p12 = scmp.lt.u32.totalorder %s1716_s17, %s2317_s7 }
  0x6b   : > { %p1719_p7 = pnand %p1717_p5, %p2038_p3 }
  0x6d   : > { %p1720_p11 = pneg %p1719_p7 }
  0x6f   : > { %p1725_p2 = pnand %p1723_p12, %p1720_p11 }
  0x71   : > { %1728 = shalt.err (!%p1725_p2)
}
  0x72   : > { %s1729_s23 = scalar_lea.vmem %s322_s29, 512  ;;  %p1737_p9 = scmp.lt.s32.totalorder %s322_s29, %s322_s29 }
  0x73   : > { %p1730_p4 = scmp.ne.s32.totalorder %s322_s29, %s1729_s23  ;;  %p1738_p10 = scmp.lt.s32.totalorder %s1729_s23, %s1729_s23 }
  0x75   : > { %p1732_p6 = pnand %p1730_p4, %p2038_p3  ;;  %p1739_p13 = por %p1738_p10, %p1737_p9 }
  0x77   : > { %p1733_p8 = pneg %p1732_p6 }
  0x79   : > { %p1740_p0 = pnand %p1739_p13, %p1733_p8 }
  0x7b   : > { %1743 = shalt.err (!%p1740_p0)
}
  0x7c   : > { %s1874_s24 = smov 128   ;;  %s1875_s16 = smov 8  }
  0x7d   : > { %1484 = dma.hbm_to_vmem [thread:$0]  (!%p2023_p1), %s2317_s7, 512, %s322_s29, [#allocation14], %s1874_s24, %s1874_s24, %s1875_s16  }
  0x7e   : > { %p2353_p5 = scmp.ne.s32.totalorder %s2348_s26, 0 }
  0x7f   : > { %p2354_p7 = scmp.ne.s32.totalorder (!%p2353_p5), %s2349_s12, 0 }
  0x80   : > { %356 = sbr.rel (%p2353_p5) target bundleno = 1777 (0x6f1), region = 52 }
  0x87   : > { %1813 = dma.done.wait (%p2354_p7), [#allocation8], 256  }
  0x88   : > { %1815 = vsyncadd (%p2354_p7), [#allocation8], 4294967040 }
  0x89   : > { %1817 = dma.done.wait (%p2354_p7), [#allocation11], 512  }
  0x8a   : > { %1819 = vsyncadd (%p2354_p7), [#allocation11], 4294966784 }
  0x8b   : > { %1821 = dma.done.wait (%p2354_p7), [#allocation14], 512  }
  0x8c   : > { %1823 = vsyncadd (%p2354_p7), [#allocation14], 4294966784  ;;  %s406_s26 = sand.u32 1, %s1834_s28   ;;  %s409_s20 = ssub.s32 1, %s1846_s9 }
  0x8d   : > { %s2142_s18 = sshll.u32 %s406_s26, 3  ;;  %s410_s27 = smul.u32 %s1842_s30, %s409_s20 }
  0x8e   : > { %s411_s29 = smul.u32 3, %s1846_s9  ;;  %p413_p1 = scmp.lt.s32.totalorder %s1850_s10, 1 }
  0x8f   : > { %p427_p3 = scmp.eq.s32.totalorder %s1846_s9, 0  ;;  %p428_p11 = scmp.eq.s32.totalorder %s1842_s30, 0 }
  0x90   : > { %s412_s12 = sadd.s32 %s411_s29, %s410_s27  ;;  %s408_s23 = scalar_lea.vmem [#allocation15], %s2142_s18 }
  0x91   : > { %s414_s14 = scalar_select %p413_p1, %s1850_s10, 1 }
  0x92   : > { %p415_p12 = scmp.lt.s32.totalorder %s412_s12, 3  ;;  %p429_p2 = pnand %p428_p11, %p427_p3 }
  0x93   : > { %s1313_s25 = sshll.u32 %s414_s14, 2  ;;  %vm433_vm0 = vcmask (!%p429_p2), 261120   ;;  %vm438_vm1 = vcmask (!%p429_p2), 7168   ;;  %v1876_v0 = vmov (!%p429_p2), 0.0  }
  0x94   : > { %s2384_s12 = smov (!%p415_p12, %s412_s12), 3  ;;  %432 = sbr.rel (%p429_p2) target bundleno = 155 (0x9b), region = 72 }
  0x95   : > { %s418_s17 = sadd.s32 %s1313_s25, %s2384_s12  ;;  %434 = vst.msk [vmem:[#allocation2] sm:$0xff] (!%p429_p2), %vm433_vm0, %v1876_v0  ;;  %435 = vst.msk [vmem:[#allocation2 + $0x8] sm:$0xff] (!%p429_p2), %vm433_vm0, %v1876_v0 }
  0x96   : > { %s1314_s19 = sshll.u32 %s418_s17, 2  ;;  %436 = vst.msk [vmem:[#allocation2 + $0x10] sm:$0xff] (!%p429_p2), %vm433_vm0, %v1876_v0  ;;  %437 = vst.msk [vmem:[#allocation2 + $0x18] sm:$0xff] (!%p429_p2), %vm433_vm0, %v1876_v0 }
  0x97   : > { %s420_s21 = scalar_lea.vmem %s2310_s0, %s1314_s19  ;;  %439 = vst.msk [vmem:[#allocation3] sm:$0xff] (!%p429_p2), %vm438_vm1, %v1876_v0  ;;  %440 = vst.msk [vmem:[#allocation3 + $0x8] sm:$0xff] (!%p429_p2), %vm438_vm1, %v1876_v0 }
  0x98   : > { %441 = vst.msk [vmem:[#allocation3 + $0x10] sm:$0xff] (!%p429_p2), %vm438_vm1, %v1876_v0  ;;  %442 = vst.msk [vmem:[#allocation3 + $0x18] sm:$0xff] (!%p429_p2), %vm438_vm1, %v1876_v0 }
  0x99   : > { %443 = vst.msk [vmem:[#allocation4] sm:$0xff] (!%p429_p2), %vm438_vm1, %v1876_v0  ;;  %444 = vst.msk [vmem:[#allocation4 + $0x8] sm:$0xff] (!%p429_p2), %vm438_vm1, %v1876_v0 }
  0x9a   : > { %445 = vst.msk [vmem:[#allocation4 + $0x10] sm:$0xff] (!%p429_p2), %vm438_vm1, %v1876_v0  ;;  %446 = vst.msk [vmem:[#allocation4 + $0x18] sm:$0xff] (!%p429_p2), %vm438_vm1, %v1876_v0 }
  0x9b PF: > { %p1315_p4 = scmp.ne.s32.totalorder %s1846_s9, 0 }
  0x9c   : > { %v450_v1 = vld [vmem:[%s420_s21] sm:$0xf] (!%p1315_p4)  ;;  %vm465_vm2 = vcmask (!%p1315_p4), 261120   ;;  %v1593_v4 = vld [vmem:[#allocation10] sm:$0xff] (!%p1315_p4)   ;;  %v1594_v5 = vld [vmem:[#allocation7 + $0x8] sm:$0xff] (!%p1315_p4)   ;;  %v1877_v8 = vmov (!%p1315_p4), 0.0  }
  0x9d   : > { %449 = sbr.rel (%p1315_p4) target bundleno = 616 (0x268), region = 76  ;;  %v1592_v2 = vld [vmem:[#allocation7] sm:$0xff] (!%p1315_p4)   ;;  %1450 = vmatprep.subr.msk.bf16.mxu0 (!%p1315_p4), %vm465_vm2, %v450_v1  ;;  %1451 = vmatprep.subr.msk.bf16.mxu1 (!%p1315_p4), %vm465_vm2, %v450_v1  ;;  %v473_v3 = vsel (!%p1315_p4), %vm465_vm2, %v450_v1, 0  ;;  %v1595_v6 = vld [vmem:[#allocation10 + $0x8] sm:$0xff] (!%p1315_p4)   ;;  %v1597_v10 = vld [vmem:[#allocation12 + $0x8] sm:$0xff] (!%p1315_p4)   ;;  %vm1878_vm3 = vmmov (!%p1315_p4), 0  }
  0x9e   : > { %1381 = vmatpush3.bf16.xpose.msra.mxu0 (!%p1315_p4), %v473_v3  ;;  %1387 = vmatpush3.bf16.xpose.msra.mxu1 (!%p1315_p4), %v473_v3  ;;  %v1596_v7 = vld [vmem:[#allocation12] sm:$0xff] (!%p1315_p4)   ;;  %v611_v11 = vsel (!%p1315_p4), %vm465_vm2, %v1597_v10, 0  ;;  %vm666_vm4 = vcmask (!%p1315_p4), 64512   ;;  %s1327_s24 = sshll.u32 (!%p1315_p4), %s1842_s30, 2  ;;  %vm656_vm5 = vcmask (!%p1315_p4), 257024   ;;  %vm683_vm6 = vcmask (!%p1315_p4), 7168  }
  0x9f   : > { %1382 = vmatprep.mubr.msk.bf16.mxu0 (!%p1315_p4), %vm465_vm2, %v1592_v2  ;;  %1388 = vmatprep.mubr.msk.bf16.mxu1 (!%p1315_p4), %vm465_vm2, %v1593_v4  ;;  %v608_v9 = vsel (!%p1315_p4), %vm465_vm2, %v1596_v7, 0  ;;  %s655_s16 = scalar_lea.vmem (!%p1315_p4), [#allocation5], %s1327_s24  ;;  %v660_v47 = vld [vmem:[#allocation3 + $0x10] sm:$0xff] (!%p1315_p4)  ;;  %v658_v48 = vld [vmem:[#allocation3] sm:$0xff] (!%p1315_p4)  ;;  %v661_v53 = vld [vmem:[#allocation3 + $0x18] sm:$0xff] (!%p1315_p4) }
  0xa0   : > { %1392 = vmatprep.subr.bf16.mxu0 (!%p1315_p4), %v1877_v8  ;;  %v688_v54 = vld [vmem:[#allocation4] sm:$0xff] (!%p1315_p4)  ;;  %v689_v59 = vld [vmem:[#allocation4 + $0x8] sm:$0xff] (!%p1315_p4)  ;;  %v722_v7 = vld [vmem:[#allocation2 + $0x10] sm:$0xff] (!%p1315_p4) }
  0xa1   : > { %v659_v60 = vld [vmem:[#allocation3 + $0x8] sm:$0xff] (!%p1315_p4)  ;;  %v690_v2 = vld [vmem:[#allocation4 + $0x10] sm:$0xff] (!%p1315_p4)  ;;  %v723_v10 = vld [vmem:[#allocation2 + $0x18] sm:$0xff] (!%p1315_p4) }
  0xa5   : > { %1383 = vmatmul.mubr.msk.bf16.vlgmr.msra.gmra.mrb[0].mxu0 %vm465_vm2, %v1594_v5  ;;  %1389 = vmatmul.mubr.msk.bf16.vlgmr.msra.gmra.mrb[0].mxu1 %vm465_vm2, %v1595_v6 }
  0xa6   : > { %1393 = vmatpush3.bf16.xpose.msra.mxu0 %v608_v9  ;;  %1396 = vmatprep.mubr.msk.bf16.mxu0 %vm1878_vm3, %v1877_v8 }
  0xa7   : > { %1394 = vmatprep.subr.bf16.mxu0 %v1877_v8  ;;  %v720_v8 = vld [vmem:[#allocation2] sm:$0xff] }
  0xae   : > { %1395 = vmatpush3.bf16.xpose.msra.mxu0 %v611_v11 }
  0xb5   : > { %1397 = vmatmul.mubr.msk.bf16.vlgmr.msra.gmra.mrb[4].mxu0 %vm465_vm2, %v450_v1  ;;  %v691_v1 = vld [vmem:[#allocation4 + $0x18] sm:$0xff] }
 0x178   : > { %v1384_v12 = vpop.f32.mrb[0].mxu0  ;;  %v1390_v13 = vpop.f32.mrb[0].mxu1 }
 0x179   : > { %v509_v14 = vpop.f32.mrb[1].mxu0  ;;  %v578_v15 = vpop.f32.mrb[1].mxu1  ;;  %v664_v16 = vmul.f32 %v1384_v12, %v1384_v12  ;;  %v694_v38 = vmul.f32 %v1390_v13, %v1390_v13 }
 0x17a   : > { %v1391_v17 = vpop.f32.mrb[2].mxu1  ;;  %v1385_v18 = vpop.f32.mrb[2].mxu0  ;;  %v662_v19 = vmul.f32 %v509_v14, %v509_v14  ;;  %v692_v25 = vmul.f32 %v578_v15, %v578_v15 }
 0x17b   : > { %v719_v20 = vpack.c.bf16 %v1391_v17, %v1390_v13  ;;  %v581_v21 = vpop.f32.mrb[3].mxu1  ;;  %v673_v22 = vsel %vm666_vm4, %v664_v16, 0.0  ;;  %v665_v23 = vmul.f32 %v1385_v18, %v1385_v18  ;;  %v512_v24 = vpop.f32.mrb[3].mxu0  ;;  %v717_v27 = vpack.c.bf16 %v1385_v18, %v1384_v12  ;;  %v721_v13 = vld [vmem:[#allocation2 + $0x8] sm:$0xff] }
 0x17c   : > { %v718_v26 = vpack.c.bf16 %v581_v21, %v578_v15  ;;  %674 = vadd.xlane.f32.xlu1 %v673_v22  ;;  %v667_v28 = vsel %vm666_vm4, %v662_v19, 0.0  ;;  %v716_v30 = vpack.c.bf16 %v512_v24, %v509_v14  ;;  %v663_v32 = vmul.f32 %v512_v24, %v512_v24 }
 0x17d   : > { %668 = vadd.xlane.f32.xlu0 %v667_v28  ;;  %v676_v29 = vsel %vm666_vm4, %v665_v23, 0.0  ;;  %v693_v33 = vmul.f32 %v581_v21, %v581_v21  ;;  %v696_v34 = vsel %vm666_vm4, %v692_v25, 0.0  ;;  %v695_v36 = vmul.f32 %v1391_v17, %v1391_v17 }
 0x17e   : > { %1452 = vmatprep.subr.msk.bf16.mxu1 %vm666_vm4, %v718_v26  ;;  %v731_v31 = vsel %vm666_vm4, %v718_v26, 0  ;;  %1404 = vmatprep.mubr.msk.bf16.mxu1 %vm666_vm4, %v716_v30  ;;  %v670_v35 = vsel %vm666_vm4, %v663_v32, 0.0  ;;  %v734_v39 = vsel %vm666_vm4, %v719_v20, 0  ;;  %v702_v41 = vsel %vm666_vm4, %v694_v38, 0.0 }
 0x17f   : > { %1401 = vmatpush3.bf16.xpose.msra.mxu1 %v731_v31  ;;  %v699_v37 = vsel %vm666_vm4, %v693_v33, 0.0  ;;  %v705_v40 = vsel %vm666_vm4, %v695_v36, 0.0 }
 0x180   : > { %1453 = vmatprep.subr.msk.bf16.mxu1 %vm666_vm4, %v719_v20  ;;  %677 = vadd.xlane.f32.xlu1 %v676_v29 }
 0x181   : > { %697 = vadd.xlane.f32.xlu0 %v696_v34 }
 0x184   : > { %700 = vadd.xlane.f32.xlu1 %v699_v37 }
 0x185   : > { %671 = vadd.xlane.f32.xlu0 %v670_v35 }
 0x187   : > { %1403 = vmatpush3.bf16.xpose.msra.mxu1 %v734_v39 }
 0x188   : > { %706 = vadd.xlane.f32.xlu1 %v705_v40  ;;  %v647_v42 = vpop.f32.mrb[4].mxu0 }
 0x189   : > { %703 = vadd.xlane.f32.xlu0 %v702_v41  ;;  %v653_v43 = vpack.c.bf16 %v647_v42, %v647_v42  ;;  %v1398_v44 = vpop.f32.mrb[5].mxu0 }
 0x18a   : > { %v650_v45 = vpop.f32.mrb[6].mxu0 }
 0x18b   : > { %657 = vst.msk [vmem:[%s655_s16] sm:$0xf] %vm656_vm5, %v653_v43  ;;  %v1399_v46 = vpop.f32.mrb[7].mxu0 }
 0x18e   : > { %1405 = vmatmul.mubr.msk.bf16.vlgmr.msra.gmra.mrb[4].mxu1 %vm666_vm4, %v717_v27 }
 0x209   : > { %v675_v49 = vpop.xlane.xlu1 %674 }
 0x20a   : > { %v681_v50 = vadd.f32 %v675_v49, %v660_v47  ;;  %v669_v51 = vpop.xlane.xlu0 %668 }
 0x20b   : > { %v679_v52 = vadd.f32 %v669_v51, %v658_v48 }
 0x20c   : > { %686 = vst.msk [vmem:[#allocation3 + $0x10] sm:$0xff] %vm683_vm6, %v681_v50 }
 0x20d   : > { %684 = vst.msk [vmem:[#allocation3] sm:$0xff] %vm683_vm6, %v679_v52  ;;  %v678_v55 = vpop.xlane.xlu1 %677 }
 0x20e   : > { %v682_v56 = vadd.f32 %v678_v55, %v661_v53  ;;  %v698_v57 = vpop.xlane.xlu0 %697 }
 0x20f   : > { %v708_v58 = vadd.f32 %v698_v57, %v688_v54 }
 0x210   : > { %687 = vst.msk [vmem:[#allocation3 + $0x18] sm:$0xff] %vm683_vm6, %v682_v56 }
 0x211   : > { %712 = vst.msk [vmem:[#allocation4] sm:$0xff] %vm683_vm6, %v708_v58  ;;  %v701_v61 = vpop.xlane.xlu1 %700 }
 0x212   : > { %v709_v62 = vadd.f32 %v701_v61, %v689_v59  ;;  %v672_v63 = vpop.xlane.xlu0 %671 }
 0x213   : > { %v680_v0 = vadd.f32 %v672_v63, %v659_v60 }
 0x214   : > { %713 = vst.msk [vmem:[#allocation4 + $0x8] sm:$0xff] %vm683_vm6, %v709_v62 }
 0x215   : > { %685 = vst.msk [vmem:[#allocation3 + $0x8] sm:$0xff] %vm683_vm6, %v680_v0  ;;  %v707_v3 = vpop.xlane.xlu1 %706 }
 0x216   : > { %v711_v4 = vadd.f32 %v707_v3, %v691_v1  ;;  %v704_v5 = vpop.xlane.xlu0 %703 }
 0x217   : > { %v710_v6 = vadd.f32 %v704_v5, %v690_v2 }
 0x218   : > { %715 = vst.msk [vmem:[#allocation4 + $0x18] sm:$0xff] %vm683_vm6, %v711_v4 }
 0x219   : > { %714 = vst.msk [vmem:[#allocation4 + $0x10] sm:$0xff] %vm683_vm6, %v710_v6 }
 0x261   : > { %v1406_v9 = vpop.f32.mrb[4].mxu1 }
 0x262   : > { %v787_v11 = vadd.f32 %v1406_v9, %v722_v7  ;;  %v770_v12 = vpop.f32.mrb[5].mxu1 }
 0x263   : > { %v785_v14 = vadd.f32 %v770_v12, %v720_v8  ;;  %v1407_v15 = vpop.f32.mrb[6].mxu1 }
 0x264   : > { %791 = vst.msk [vmem:[#allocation2 + $0x10] sm:$0xff] %vm465_vm2, %v787_v11  ;;  %v788_v16 = vadd.f32 %v1407_v15, %v723_v10  ;;  %v773_v17 = vpop.f32.mrb[7].mxu1 }
 0x265   : > { %789 = vst.msk [vmem:[#allocation2] sm:$0xff] %vm465_vm2, %v785_v14  ;;  %v786_v18 = vadd.f32 %v773_v17, %v721_v13 }
 0x266   : > { %792 = vst.msk [vmem:[#allocation2 + $0x18] sm:$0xff] %vm465_vm2, %v788_v16 }
 0x267   : > { %790 = vst.msk [vmem:[#allocation2 + $0x8] sm:$0xff] %vm465_vm2, %v786_v18 }
 0x268 PF: > { %p1330_p6 = scmp.ne.s32.totalorder %s1846_s9, 1 }
 0x269   : > { %p1331_p8 = scmp.ne.s32.totalorder (!%p1330_p6), %s1842_s30, 0 }
 0x26a   : > { %796 = sbr.rel (%p1330_p6) target bundleno = 1749 (0x6d5), region = 80 }
 0x271   : > { %799 = sbr.rel (%p1331_p8) target bundleno = 1520 (0x5f0), region = 84  ;;  %v812_v19 = vld [vmem:[#allocation4] sm:$0xff] (!%p1331_p8)  ;;  %v813_v20 = vld [vmem:[#allocation4 + $0x8] sm:$0xff] (!%p1331_p8)  ;;  %v814_v21 = vld [vmem:[#allocation4 + $0x10] sm:$0xff] (!%p1331_p8)  ;;  %vm832_vm7 = vcmask (!%p1331_p8), 7168   ;;  %vm958_vm9 = vcmask (!%p1331_p8), 261120  }
 0x272   : > { %v816_v22 = vmax.f32 (!%p1331_p8), %v812_v19, 1e-24  ;;  %v817_v23 = vmax.f32 (!%p1331_p8), %v813_v20, 1e-24  ;;  %v815_v24 = vld [vmem:[#allocation4 + $0x18] sm:$0xff] (!%p1331_p8)  ;;  %v800_v25 = vld [vmem:[#allocation3] sm:$0xff] (!%p1331_p8)  ;;  %vm2196_vm8 = vmpackc.low (!%p1331_p8), %vm832_vm7, %vm832_vm7 }
 0x273   : > { %v818_v26 = vmax.f32 (!%p1331_p8), %v814_v21, 1e-24  ;;  %v819_v27 = vmax.f32 (!%p1331_p8), %v815_v24, 1e-24  ;;  %v804_v28 = vmax.f32 (!%p1331_p8), %v800_v25, 1e-24 }
 0x274   : > { %1600 = vrsqrt.f32 (!%p1331_p8), %v816_v22  ;;  %v801_v29 = vld [vmem:[#allocation3 + $0x8] sm:$0xff] (!%p1331_p8)  ;;  %v802_v30 = vld [vmem:[#allocation3 + $0x10] sm:$0xff] (!%p1331_p8)  ;;  %v803_v34 = vld [vmem:[#allocation3 + $0x18] sm:$0xff] (!%p1331_p8) }
 0x275   : > { %1602 = vrsqrt.f32 (!%p1331_p8), %v817_v23  ;;  %v805_v31 = vmax.f32 (!%p1331_p8), %v801_v29, 1e-24  ;;  %v806_v33 = vmax.f32 (!%p1331_p8), %v802_v30, 1e-24  ;;  %v824_v39 = vld [vmem:[%s2315_s5] sm:$0xff] (!%p1331_p8)  ;;  %v825_v46 = vld [vmem:[%s2315_s5 + $0x8] sm:$0xff] (!%p1331_p8) }
 0x276   : > { %1604 = vrsqrt.f32 (!%p1331_p8), %v818_v26  ;;  %v807_v41 = vmax.f32 (!%p1331_p8), %v803_v34, 1e-24  ;;  %v826_v48 = vld [vmem:[%s2315_s5 + $0x10] sm:$0xff] (!%p1331_p8)  ;;  %v827_v52 = vld [vmem:[%s2315_s5 + $0x18] sm:$0xff] (!%p1331_p8)  ;;  %v943_v54 = vld [vmem:[#allocation2 + $0x8] sm:$0xff] (!%p1331_p8) }
 0x277   : > { %1606 = vrsqrt.f32 (!%p1331_p8), %v819_v27  ;;  %v942_v55 = vld [vmem:[#allocation2] sm:$0xff] (!%p1331_p8)  ;;  %v950_v58 = vld [vmem:[#allocation13] sm:$0xff] (!%p1331_p8)  ;;  %v945_v61 = vld [vmem:[#allocation2 + $0x18] sm:$0xff] (!%p1331_p8) }
 0x278   : > { %1608 = vrsqrt.f32 %v804_v28  ;;  %v944_v62 = vld [vmem:[#allocation2 + $0x10] sm:$0xff]  ;;  %v951_v63 = vld [vmem:[#allocation13 + $0x8] sm:$0xff]  ;;  %v952_v3 = vld [vmem:[#allocation13 + $0x10] sm:$0xff] }
 0x279   : > { %1610 = vrsqrt.f32 %v805_v31  ;;  %v953_v8 = vld [vmem:[#allocation13 + $0x18] sm:$0xff]  ;;  %v1598_v34 = vld [vmem:[%s2314_s4] sm:$0xff]  }
 0x27a   : > { %1612 = vrsqrt.f32 %v806_v33  ;;  %1422 = vmatprep.subr.bf16.mxu1 %v1598_v34 }
 0x27b   : > { %1614 = vrsqrt.f32 %v807_v41  ;;  %1423 = vmatpush3.bf16.msra.mxu1 %v1598_v34 }
 0x27e   : > { %v1601_v32 = vpop.eup %1600 }
 0x27f   : > { %v1603_v35 = vpop.eup %1602 }
 0x280   : > { %v1605_v37 = vpop.eup %1604  ;;  %v1438_v38 = vpack.c.bf16 %v1603_v35, %v1601_v32  ;;  %v1599_v35 = vld [vmem:[%s2314_s4 + $0x8] sm:$0xff]  }
 0x281   : > { %v1607_v40 = vpop.eup %1606  ;;  %1424 = vmatprep.subr.bf16.mxu1 %v1599_v35 }
 0x282   : > { %v1609_v42 = vpop.eup %1608  ;;  %1440 = vmatprep.subr.msk.bf16.mxu0 %vm2196_vm8, %v1438_v38  ;;  %v1444_v43 = vpack.c.bf16 %v1607_v40, %v1605_v37  ;;  %1425 = vmatpush3.bf16.msra.mxu1 %v1599_v35 }
 0x283   : > { %1443 = vmatpush3.bf16.xpose.msk.msra.mxu0 %vm2196_vm8, %v1438_v38  ;;  %v828_v44 = vmul.f32 %v1609_v42, %v824_v39  ;;  %v1611_v45 = vpop.eup %1610 }
 0x284   : > { %1446 = vmatprep.subr.msk.bf16.mxu0 %vm2196_vm8, %v1444_v43  ;;  %v1613_v47 = vpop.eup %1612  ;;  %v829_v49 = vmul.f32 %v1611_v45, %v825_v46 }
 0x285   : > { %1416 = vmatprep.mubr.msk.f32.mxu0 %vm832_vm7, %v828_v44  ;;  %v1615_v50 = vpop.eup %1614  ;;  %v830_v51 = vmul.f32 %v1613_v47, %v826_v48 }
 0x286   : > { %v831_v53 = vmul.f32 %v1615_v50, %v827_v52 }
 0x28b   : > { %1449 = vmatpush3.bf16.xpose.msk.msra.mxu0 %vm2196_vm8, %v1444_v43 }
 0x292   : > { %1417 = vmatmul.mubr.msk.f32.vlgmr.msra.gmra.mrb[0].mxu0 %vm832_vm7, %v829_v49 }
 0x293   : > { %1419 = vmatprep.mubr.msk.f32.mxu0 %vm832_vm7, %v830_v51 }
 0x296   : > { %1420 = vmatmul.mubr.msk.f32.gmra.mrb[2].mxu0 %vm832_vm7, %v831_v53 }
 0x365   : > { %v1418_v56 = vpop.f32.mrb[0].mxu0 }
 0x366   : > { %v923_v57 = vpop.f32.mrb[1].mxu0  ;;  %v947_v59 = vmul.f32 %v1418_v56, %v943_v54 }
 0x367   : > { %v946_v60 = vmul.f32 %v942_v55, %v923_v57 }
 0x368   : > { %v955_v7 = vadd.f32 %v951_v63, %v947_v59 }
 0x369   : > { %v1421_v0 = vpop.f32.mrb[2].mxu0  ;;  %v954_v1 = vadd.f32 %v950_v58, %v946_v60 }
 0x36a   : > { %v933_v2 = vpop.f32.mrb[3].mxu0  ;;  %v949_v4 = vmul.f32 %v1421_v0, %v945_v61  ;;  %v962_v10 = vsel %vm958_vm9, %v955_v7, -inf }
 0x36b   : > { %v948_v5 = vmul.f32 %v944_v62, %v933_v2  ;;  %v959_v6 = vsel %vm958_vm9, %v954_v1, -inf }
 0x36c   : > { %960 = vmax.xlane.f32.xlu0 %v959_v6  ;;  %v957_v12 = vadd.f32 %v953_v8, %v949_v4 }
 0x36d   : > { %v956_v9 = vadd.f32 %v952_v3, %v948_v5 }
 0x36e   : > { %v968_v13 = vsel %vm958_vm9, %v957_v12, -inf }
 0x36f   : > { %v965_v11 = vsel %vm958_vm9, %v956_v9, -inf }
 0x370   : > { %963 = vmax.xlane.f32.xlu0 %v962_v10  ;;  %966 = vmax.xlane.f32.xlu1 %v965_v11 }
 0x374   : > { %969 = vmax.xlane.f32.xlu1 %v968_v13 }
 0x3f9   : > { %v961_v14 = vpop.xlane.xlu0 %960 }
 0x3fa   : > { %v971_v15 = vsub.f32 %v954_v1, %v961_v14 }
 0x3fc   : > { %v975_v16 = vmul.f32 1.442695, %v971_v15 }
 0x3fd   : > { %v964_v17 = vpop.xlane.xlu0 %963  ;;  %v967_v18 = vpop.xlane.xlu1 %966 }
 0x3fe   : > { %1616 = vpow2.f32 %v975_v16  ;;  %v972_v19 = vsub.f32 %v955_v7, %v964_v17  ;;  %v973_v20 = vsub.f32 %v956_v9, %v967_v18 }
 0x400   : > { %v977_v21 = vmul.f32 1.442695, %v972_v19  ;;  %v979_v22 = vmul.f32 1.442695, %v973_v20 }
 0x401   : > { %v970_v23 = vpop.xlane.xlu1 %969 }
 0x402   : > { %1618 = vpow2.f32 %v977_v21  ;;  %v974_v24 = vsub.f32 %v957_v12, %v970_v23 }
 0x403   : > { %1620 = vpow2.f32 %v979_v22 }
 0x404   : > { %v981_v25 = vmul.f32 1.442695, %v974_v24 }
 0x406   : > { %1622 = vpow2.f32 %v981_v25 }
 0x408   : > { %v1617_v26 = vpop.eup %1616 }
 0x409   : > { %v983_v27 = vsel %vm958_vm9, %v1617_v26, 0.0 }
 0x40a   : > { %984 = vadd.xlane.f32.xlu0 %v983_v27 }
 0x40c   : > { %v1619_v28 = vpop.eup %1618 }
 0x40d   : > { %v1621_v29 = vpop.eup %1620  ;;  %v986_v30 = vsel %vm958_vm9, %v1619_v28, 0.0 }
 0x40e   : > { %987 = vadd.xlane.f32.xlu1 %v986_v30  ;;  %v989_v31 = vsel %vm958_vm9, %v1621_v29, 0.0 }
 0x40f   : > { %990 = vadd.xlane.f32.xlu0 %v989_v31 }
 0x410   : > { %v1623_v32 = vpop.eup %1622 }
 0x411   : > { %v992_v33 = vsel %vm958_vm9, %v1623_v32, 0.0 }
 0x412   : > { %993 = vadd.xlane.f32.xlu1 %v992_v33 }
 0x497   : > { %v985_v36 = vpop.xlane.xlu0 %984 }
 0x498   : > { %1624 = vrcp.f32 %v985_v36 }
 0x49b   : > { %v988_v37 = vpop.xlane.xlu1 %987 }
 0x49c   : > { %v991_v38 = vpop.xlane.xlu0 %990  ;;  %1626 = vrcp.f32 %v988_v37 }
 0x49d   : > { %1628 = vrcp.f32 %v991_v38 }
 0x49f   : > { %v994_v39 = vpop.xlane.xlu1 %993 }
 0x4a0   : > { %1630 = vrcp.f32 %v994_v39 }
 0x4a2   : > { %v1625_v40 = vpop.eup %1624 }
 0x4a3   : > { %v996_v42 = vmul.f32 %v1625_v40, %v1617_v26 }
 0x4a6   : > { %v1627_v41 = vpop.eup %1626 }
 0x4a7   : > { %v998_v43 = vmul.f32 %v1627_v41, %v1619_v28  ;;  %v1629_v44 = vpop.eup %1628 }
 0x4a8   : > { %v1000_v47 = vmul.f32 %v1629_v44, %v1621_v29 }
 0x4a9   : > { %v1003_v45 = vpack.c.bf16 %v998_v43, %v996_v42 }
 0x4aa   : > { %v1631_v46 = vpop.eup %1630 }
 0x4ab   : > { %1009 = vxpose.xlu0.c.b16.start [1/2] (short) (narrow) %v1003_v45, 32  ;;  %v1002_v48 = vmul.f32 %v1631_v46, %v1623_v32 }
 0x4ad   : > { %v1004_v49 = vpack.c.bf16 %v1002_v48, %v1000_v47 }
 0x4af   : > { %1010 = vxpose.xlu0.c.b16.end [2/2] (short) (narrow) %v1004_v49, 32 }
 0x511   : > { %v1017_v50 = vpop.trf.xlu0 }
 0x512   : > { %1426 = vmatprep.mubr.msk.bf16.mxu1 %vm958_vm9, %v1017_v50 }
 0x515   : > { %v1018_v51 = vpop.trf.xlu0 }
 0x516   : > { %1427 = vmatmul.mubr.msk.bf16.vlgmr.msra.gmra.mrb[0].mxu1 %vm958_vm9, %v1018_v51 }
 0x5e9   : > { %v1428_v52 = vpop.f32.mrb[0].mxu1 }
 0x5ea   : > { %v1077_v53 = vpop.f32.mrb[1].mxu1 }
 0x5eb   : > { %v1429_v54 = vpop.f32.mrb[2].mxu1 }
 0x5ec   : > { %v1093_v55 = vpack.c.bf16 %v1429_v54, %v1428_v52  ;;  %v1080_v56 = vpop.f32.mrb[3].mxu1 }
 0x5ed   : > { %v1092_v57 = vpack.c.bf16 %v1080_v56, %v1077_v53 }
 0x5ee   : > { %1095 = vst.msk [vmem:[#allocation6 + $0x8] sm:$0xff] %vm958_vm9, %v1093_v55 }
 0x5ef   : > { %1094 = vst.msk [vmem:[#allocation6] sm:$0xff] %vm958_vm9, %v1092_v57 }
 0x5f0 PF: > { %s1344_s21 = sshll.u32 %s1842_s30, 2  ;;  %v1879_v59 = vmov 0.0   ;;  %vm1880_vm10 = vmmov 0   ;;  %vm1108_vm11 = vcmask 261120   ;;  %v1345_v62 = vld [vmem:[%s2316_s6] ss:$0 sm:$0xff] }
 0x5f1   : > { %1430 = vmatprep.subr.bf16.mxu0 %v1879_v59  ;;  %1434 = vmatprep.mubr.msk.bf16.mxu0 %vm1880_vm10, %v1879_v59  ;;  %s1097_s24 = scalar_lea.vmem [#allocation5], %s1344_s21 }
 0x5f2   : > { %v1098_v61 = vld [vmem:[%s1097_s24] sm:$0xf] }
 0x5f5   : > { %v1100_v60 = vld [vmem:[#allocation6 + $0x8] sm:$0xff] }
 0x5f6   : > { %v1099_v58 = vld [vmem:[#allocation6] sm:$0xff] }
 0x5f7   : > { %1431 = vmatpush3.bf16.msra.mxu0 %v1099_v58 }
 0x5f8   : > { %1432 = vmatprep.subr.bf16.mxu0 %v1879_v59 }
 0x5fb   : > { %1433 = vmatpush3.bf16.msra.mxu0 %v1100_v60 }
 0x5fe   : > { %1435 = vmatmul.mubr.msk.bf16.vlgmr.msra.gmra.mrb[0].mxu0 %vm1108_vm11, %v1098_v61 }
 0x6d1   : > { %v1146_v63 = vpop.f32.mrb[0].mxu0 }
 0x6d2   : > { %v1147_v0 = vadd.f32 %v1345_v62, %v1146_v63  ;;  %v1436_v1 = vpop.f32.mrb[1].mxu0 }
 0x6d3   : > { %v1149_v2 = vpop.f32.mrb[2].mxu0 }
 0x6d4   : > { %1152 = vst.msk [vmem:[%s408_s23] sm:$0xff] %vm1108_vm11, %v1147_v0  ;;  %v1437_v3 = vpop.f32.mrb[3].mxu0 }
 0x6d5 PF: > { %s1161_s8 = smul.u32 %s1842_s30, %s1846_s9  ;;  %s1348_s20 = sshll.u32 %s1850_s10, 2 }
 0x6d6   : > { %s1170_s27 = sshll.u32 %s408_s23, 4  ;;  %s2357_s17 = sld [smem:[#allocation31_spill]]  ;;  %s2253_s27 = int_to_ptr.vmem [resolvable:$true] %s1170_s27 }
 0x6d7   : > { %s1166_s29 = sadd.s32 %s1348_s20, %s1161_s8  ;;  %s1154_s13 = scalar_lea.sflag [#allocation9], %s406_s26 }
 0x6d8   : > { %s1349_s12 = sshll.u32 %s1166_s29, 7  ;;  %s1744_s11 = scalar_lea.vmem %s2253_s27, 128 }
 0x6d9   : > { %p1745_p9 = scmp.ne.s32.totalorder %s2253_s27, %s1744_s11  ;;  %p2358_p10 = scmp.ne.s32.totalorder %s2343_s22, 0 }
 0x6da   : > { %s1881_s30 = smov [#allocation15]  }
 0x6db   : > { %p1746_p13 = pnand %p1745_p9, %p2358_p10  ;;  %s1748_s9 = sshll.u32 %s1881_s30, 4  ;;  %s1749_s9 = int_to_ptr.vmem [resolvable:$false] %s1748_s9 }
 0x6dc   : > { %s1168_s19 = scalar_lea.hbm %s2357_s17, %s1349_s12  ;;  %s1750_s10 = scalar_lea.vmem %s1749_s9, 256 }
 0x6dd   : > { %p1747_p0 = pneg %p1746_p13  ;;  %p1751_p5 = scmp.lt.s32.totalorder %s2253_s27, %s1749_s9 }
 0x6de   : > { %p1752_p7 = scmp.lt.s32.totalorder %s1750_s10, %s1744_s11 }
 0x6e0   : > { %p1753_p1 = por %p1752_p7, %p1751_p5 }
 0x6e2   : > { %p1754_p3 = pnand %p1753_p1, %p1747_p0 }
 0x6e4   : > { %1757 = shalt.err (!%p1754_p3)
}
 0x6e5   : > { %s1758_s18 = scalar_lea.hbm %s1168_s19, 128  ;;  %s1762_s21 = scalar_lea.hbm %s2357_s17, 1024 }
 0x6e6   : > { %p1759_p11 = scmp.ne.s32.totalorder %s1168_s19, %s1758_s18  ;;  %p1763_p4 = scmp.lt.u32.totalorder %s1168_s19, %s2357_s17 }
 0x6e7   : > { %p1764_p6 = scmp.lt.u32.totalorder %s1762_s21, %s1758_s18  ;;  %p1766_p9 = scmp.lt.u32.totalorder %s1758_s18, %s1168_s19 }
 0x6e8   : > { %p1760_p12 = pnand %p1759_p11, %p2358_p10 }
 0x6e9   : > { %p1765_p8 = por %p1764_p6, %p1763_p4 }
 0x6ea   : > { %p1761_p2 = pneg %p1760_p12 }
 0x6eb   : > { %p1767_p13 = por %p1766_p9, %p1765_p8 }
 0x6ed   : > { %p1768_p0 = pnand %p1767_p13, %p1761_p2 }
 0x6ef   : > { %1771 = shalt.err (!%p1768_p0)
}
 0x6f0   : > { %1470 = dma.vmem_to_hbm [thread:$0]  (%p2358_p10), %s2253_s27, 128, %s1168_s19, %s1154_s13  }
 0x6f1 PF: > { %s2359_s15 = sld [smem:[#allocation25_spill]]  ;;  %s2360_s8 = sld [smem:[#allocation20_spill]] }
 0x6f2   : > { %s2361_s20 = sld [smem:[#allocation28_spill]] }
 0x6f7   : > { %p1497_p5 = scmp.ge.s32.totalorder %s2359_s15, 2  ;;  %s1182_s29 = sand.u32 1, %s2360_s8  }
 0x6f8   : > { %p2362_p7 = scmp.ne.s32.totalorder %s2361_s20, 0  ;;  %s1183_s12 = scalar_lea.sflag [#allocation9], %s1182_s29 }
 0x6fa   : > { %p1486_p1 = pnand %p1497_p5, %p2362_p7 }
 0x6fc   : > { %1825 = dma.done.wait (!%p1486_p1), %s1183_s12, 128  }
 0x6fd   : > { %1827 = vsyncadd (!%p1486_p1), %s1183_s12, 4294967168  ;;  %s24_s14 = sadd.s32 1, %s2359_s15   ;;  %s2363_s25 = sld [smem:[#allocation21_spill]] }
 0x6fe   : > { %p21_p3 = scmp.ge.s32.totalorder %s24_s14, 18   ;;  %s2364_s29 = sld [smem:[#allocation30_spill]] }
 0x6ff   : > { %s2365_s30 = sld [smem:[#allocation22_spill]]  ;;  %s2366_s9 = sld [smem:[#allocation23_spill]] }
 0x700   : > { %s2367_s10 = sld [smem:[#allocation24_spill]]  ;;  %s2368_s11 = sld [smem:[#allocation26_spill]] }
 0x701   : > { %s2369_s12 = sld [smem:[#allocation27_spill]]  ;;  %s2370_s13 = sld [smem:[#allocation29_spill]] }
 0x702   : > { %s2371_s27 = smov %s1834_s28  ;;  %23 = sbr.rel (!%p21_p3) target bundleno = 11 (0xb), region = 122 }
 0x703   : > { %s2372_s28 = smov %s2363_s25 }
 0x709   :  { %1188 = vsyncpa [#allocation8], 1 }
 0x70a   :  { %1190 = vsyncpa [#allocation8 + $0x1], 1 }
 0x70b   :  { %1191 = vsyncpa [#allocation11], 1 }
 0x70c   :  { %1192 = vsyncpa [#allocation14], 1 }
 0x70d   :  { %1193 = vsyncpa [#allocation9], 1 }
 0x70e   :  { %1195 = vsyncpa [#allocation9 + $0x1], 1 }

</bundles_post_ra>
